<compile_context>
chip_gen: v5e
topology: v5e:2x2
jax: 0.10.0
libtpu: 0.0.40
codegen_flags: <defaults>
</compile_context>

<pallas_src>
import jax
import jax.numpy as jnp
from jax.experimental import pallas as pl
from jax.experimental.pallas import tpu as pltpu


def _round_up(x, m):
    return ((x + m - 1) // m) * m


def _cast_bn_kernel(x_ref, scale_ref, bias_ref, o_ref):
    # x_ref: (TR, TC) in the input dtype; scale/bias: (TR, 1) float32.
    # Wrapped module (BatchNorm2d eval) computes in f32; the result is cast
    # back to the input dtype (the CastToFloat f32 round-trip is bit-exact
    # for float inputs, so it is fused away here).
    y = x_ref[...].astype(jnp.float32) * scale_ref[...] + bias_ref[...]
    o_ref[...] = y.astype(o_ref.dtype)


def _vmem_budget():
    """(max input-block bytes, vmem_limit_bytes) per chip generation."""
    try:
        cap = int(pltpu.get_tpu_info().vmem_capacity_bytes)
    except Exception:
        cap = 64 * 1024 * 1024  # conservative: assume v7x-sized VMEM
    if cap >= 128 * 1024 * 1024:                    # v5e / v6e
        return 8 * 1024 * 1024, 96 * 1024 * 1024
    return 4 * 1024 * 1024, 48 * 1024 * 1024        # v7x (64 MiB physical)


def _pick_tiles(R, HW, itemsize, max_block_bytes):
    """Adaptive 8-aligned row tile x 128-aligned (lane-dense) column tile."""
    TR_full = _round_up(R, 8)
    TC_full = _round_up(HW, 128)
    target = max(1, max_block_bytes // itemsize)    # elements per input block
    # Prefer wide, lane-dense blocks: take as many columns as the target
    # allows at a minimal 8-row tile, then grow rows (rounded DOWN to a
    # multiple of 8 so the block never meaningfully exceeds the target).
    TC = min(TC_full, _round_up(max(128, target // 8), 128))
    TR = min(TR_full, max(8, (target // TC) // 8 * 8))
    return TR, TC


def cast_to_float_forward(x_nchw, gamma, beta, running_mean, running_var,
                          eps=1e-5, autocast_enabled=True):
    """CastToFloat(mod=BatchNorm2d(C, eval)).forward(x), x in NCHW.

    autocast_enabled only toggles the (bit-exact) input f32 round-trip in the
    PyTorch reference; both paths lower to the same fused kernel here.
    """
    del autocast_enabled  # f32 round-trip is a no-op for float dtypes
    N, C, H, W = x_nchw.shape
    HW = H * W
    R = N * C
    dtype = x_nchw.dtype

    # Fold BN running stats + affine params into per-channel scale/bias (glue).
    scale_c = (gamma / jnp.sqrt(running_var + eps)).astype(jnp.float32)
    bias_c = (beta - running_mean * scale_c).astype(jnp.float32)
    scale_rows = jnp.tile(scale_c, N).reshape(R, 1)
    bias_rows = jnp.tile(bias_c, N).reshape(R, 1)

    # Flatten to (N*C, H*W): lane dim is spatial, rows broadcast scale/bias.
    x2d = x_nchw.reshape(R, HW)

    max_block_bytes, vmem_limit = _vmem_budget()
    TR, TC = _pick_tiles(R, HW, jnp.dtype(dtype).itemsize, max_block_bytes)

    # No padding / post-slice: pl.cdiv grid, Pallas masks partial edge blocks.
    grid = (pl.cdiv(R, TR), pl.cdiv(HW, TC))

    out2d = pl.pallas_call(
        _cast_bn_kernel,
        out_shape=jax.ShapeDtypeStruct((R, HW), dtype),
        grid_spec=pltpu.PrefetchScalarGridSpec(
            num_scalar_prefetch=0,
            # Column (lane-dense) axis is the innermost grid axis: scale/bias
            # index_maps are constant in j, so their blocks are reused (no
            # re-DMA) across consecutive steps.  Do not reorder rows-inner.
            grid=grid,
            in_specs=[
                pl.BlockSpec((TR, TC), lambda i, j: (i, j)),
                pl.BlockSpec((TR, 1), lambda i, j: (i, 0)),
                pl.BlockSpec((TR, 1), lambda i, j: (i, 0)),
            ],
            out_specs=pl.BlockSpec((TR, TC), lambda i, j: (i, j)),
        ),
        compiler_params=pltpu.CompilerParams(
            # Pure elementwise map: no accumulation across either axis, so
            # both are parallel -> v7x megacore can shard whichever axis has
            # extent (matters when R fits in a single row tile); neutral on
            # single-TC v5e/v6e.
            dimension_semantics=("parallel", "parallel"),
            vmem_limit_bytes=vmem_limit,
        ),
    )(x2d, scale_rows, bias_rows)

    return out2d.reshape(N, C, H, W)


if __name__ == "__main__":
    key = jax.random.PRNGKey(0)
    k_x, k_g, k_b, k_m, k_v = jax.random.split(key, 5)

    N, C, H, W = 2, 4, 16, 16
    # bfloat16 input exercises the autocast path.
    x = jax.random.normal(k_x, (N, C, H, W), dtype=jnp.float32).astype(jnp.bfloat16)

    # Deterministic BatchNorm2d(C) parameters / running stats.
    gamma = jax.random.normal(k_g, (C,), dtype=jnp.float32) * 0.1 + 1.0
    beta = jax.random.normal(k_b, (C,), dtype=jnp.float32) * 0.1
    running_mean = jax.random.normal(k_m, (C,), dtype=jnp.float32) * 0.05
    running_var = jnp.abs(jax.random.normal(k_v, (C,), dtype=jnp.float32)) * 0.1 + 1.0

    out = cast_to_float_forward(x, gamma, beta, running_mean, running_var,
                                autocast_enabled=True)
    out = jax.block_until_ready(out)

    # Pure-JAX reference (f32 round-trip of the input is a no-op for bf16,
    # kept for fidelity to the PyTorch semantics).
    xr = x.astype(jnp.float32).astype(x.dtype).astype(jnp.float32)
    sc = gamma / jnp.sqrt(running_var + 1e-5)
    bi = beta - running_mean * sc
    ref = (xr * sc[None, :, None, None] + bi[None, :, None, None]).astype(x.dtype)

    assert out.shape == (N, C, H, W) and out.dtype == x.dtype
    assert jnp.allclose(out.astype(jnp.float32), ref.astype(jnp.float32),
                        atol=1e-2, rtol=1e-2)
    print("KERNEL_OK")
</pallas_src>

<mosaic_0001>
module attributes {stable_mosaic.version = 11 : i64} {
  func.func @_cast_bn_kernel(%arg0: i32, %arg1: i32, %arg2: memref<8x256xbf16, #tpu.memory_space<vmem>>, %arg3: memref<8x1xf32, #tpu.memory_space<vmem>>, %arg4: memref<8x1xf32, #tpu.memory_space<vmem>>, %arg5: memref<8x256xbf16, #tpu.memory_space<vmem>>) attributes {dimension_semantics = [#tpu.dimension_semantics<parallel>, #tpu.dimension_semantics<parallel>], iteration_bounds = array<i64: 1, 1>, scalar_prefetch = 0 : i64, scratch_operands = 0 : i64, tpu.core_type = #tpu.core_type<tc>, window_params = [{transform_indices = @transform_0, window_bounds = array<i64: 8, 256>}, {transform_indices = @transform_1, window_bounds = array<i64: 8, 1>}, {transform_indices = @transform_2, window_bounds = array<i64: 8, 1>}, {transform_indices = @transform_3, window_bounds = array<i64: 8, 256>}]} {
    %c0 = arith.constant 0 : index
    %c0_0 = arith.constant 0 : index
    %0 = vector.load %arg2[%c0, %c0_0] : memref<8x256xbf16, #tpu.memory_space<vmem>>, vector<8x256xbf16>
    %1 = arith.extf %0 : vector<8x256xbf16> to vector<8x256xf32>
    %c0_1 = arith.constant 0 : index
    %c0_2 = arith.constant 0 : index
    %2 = vector.load %arg3[%c0_1, %c0_2] : memref<8x1xf32, #tpu.memory_space<vmem>>, vector<8x1xf32>
    %3 = vector.broadcast %2 : vector<8x1xf32> to vector<8x256xf32>
    %4 = arith.mulf %1, %3 : vector<8x256xf32>
    %c0_3 = arith.constant 0 : index
    %c0_4 = arith.constant 0 : index
    %5 = vector.load %arg4[%c0_3, %c0_4] : memref<8x1xf32, #tpu.memory_space<vmem>>, vector<8x1xf32>
    %6 = vector.broadcast %5 : vector<8x1xf32> to vector<8x256xf32>
    %7 = arith.addf %4, %6 : vector<8x256xf32>
    %8 = arith.truncf %7 : vector<8x256xf32> to vector<8x256xbf16>
    %c0_5 = arith.constant 0 : index
    %c0_6 = arith.constant 0 : index
    %9 = vector.load %arg5[%c0_5, %c0_6] : memref<8x256xbf16, #tpu.memory_space<vmem>>, vector<8x256xbf16>
    tpu.vector_store %arg5[%c0_5, %c0_6], %8 {strides = array<i32>} : memref<8x256xbf16, #tpu.memory_space<vmem>>, vector<8x256xbf16>,
    return
  }
  func.func @transform_0(%arg0: i32, %arg1: i32) -> (i32, i32) {
    %c0_i32 = arith.constant 0 : i32
    return %arg0, %arg1 : i32, i32
  }
  func.func @transform_1(%arg0: i32, %arg1: i32) -> (i32, i32) {
    %c0_i32 = arith.constant 0 : i32
    %c0_i32_0 = arith.constant 0 : i32
    return %arg0, %c0_i32 : i32, i32
  }
  func.func @transform_2(%arg0: i32, %arg1: i32) -> (i32, i32) {
    %c0_i32 = arith.constant 0 : i32
    %c0_i32_0 = arith.constant 0 : i32
    return %arg0, %c0_i32 : i32, i32
  }
  func.func @transform_3(%arg0: i32, %arg1: i32) -> (i32, i32) {
    %c0_i32 = arith.constant 0 : i32
    return %arg0, %arg1 : i32, i32
  }
}

</mosaic_0001>

<bundles_post_ra>
// kernel: tpu_custom_call.1
= control target key start
LH: loop header
LB: loop body
LE: loop exit
PB: predicated region body
PF: predicated region fallthrough
CT: control target
= control target key end

     0   :  { %s115_s0 = inlined_call_operand.vmem [shape: bf16[8,256], index: 0, kind: input, shape index: {}]   ;;  %s116_s1 = inlined_call_operand.vmem [shape: f32[8,1], index: 1, kind: input, shape index: {}]   ;;  %s117_s2 = inlined_call_operand.vmem [shape: f32[8,1], index: 2, kind: input, shape index: {}]   ;;  %s118_s3 = inlined_call_operand.hbm [shape: bf16[8,256], index: 3, kind: output, shape index: {}]  }
   0x1   :  { %v18_v0 = vld [vmem:[%s116_s1] sm:$0xff] }
   0x2   :  { %8 = vsyncpa [#allocation3], 0  ;;  %v81_v1 = vmov 0   ;;  %v26_v2 = vld [vmem:[%s117_s2] sm:$0xff]  ;;  %s82_s1 = smov [#allocation2]   ;;  %s43_s21 = sshll.u32 %s118_s3, 4  ;;  %s44_s21 = int_to_ptr.hbm [resolvable:$true] %s43_s21 }
   0x3   :  { %54 = vset.pattern.permute.xlu0 %v81_v1  ;;  %v15_v4 = vld [vmem:[%s115_s0] sm:$0xff]  ;;  %s41_s18 = sshll.u32 %s82_s1, 4  ;;  %s42_s18 = int_to_ptr.vmem [resolvable:$true] %s41_s18 }
   0x4   :  { %21 = vperm.xlu0 %54, %v18_v0   ;;  %v16_v5 = vunpack.c.l.bf16 %v15_v4  ;;  %v17_v6 = vunpack.c.h.bf16 %v15_v4 }
   0xc   :  { %29 = vperm.xlu0 %54, %v26_v2  }
  0x76   :  { %v22_v3 = vpop.permute.xlu0 %21 }
  0x77   :  { %v24_v7 = vmul.f32 %v22_v3, %v16_v5  ;;  %v25_v8 = vmul.f32 %v22_v3, %v17_v6 }
  0x7e   :  { %v30_v9 = vpop.permute.xlu0 %29 }
  0x7f   :  { %v32_v10 = vadd.f32 %v30_v9, %v24_v7  ;;  %v33_v11 = vadd.f32 %v30_v9, %v25_v8 }
  0x81   :  { %v34_v12 = vpack.c.bf16 %v33_v11, %v32_v10 }
  0x83   :  { %35 = vst [vmem:[#allocation2] sm:$0xff] %v34_v12 }
  0x84   :  { %46 = dma.vmem_to_hbm [thread:$0]  %s42_s18, 128, %s44_s21, [#allocation3]  }
  0x85   :  { %79 = dma.done.wait [#allocation3], 128  }
  0x86   :  { %80 = vsyncadd [#allocation3], 4294967168 }
  0x87   :  { %51 = vsyncpa [#allocation3], 1 }

</bundles_post_ra>
